<compile_context>
chip_gen: v7x
topology: tpu7x:2x2x1
jax: 0.10.0
libtpu: 0.0.40
codegen_flags: <defaults>
</compile_context>

<pallas_src>
from functools import partial

import jax
import jax.numpy as jnp
import numpy as np
from jax.experimental import pallas as pl
from jax.experimental.pallas import tpu as pltpu


def _round_up(x, m):
    return (x + m - 1) // m * m


def _as_f32(x):
    # Skip the no-op cast when the inputs are already f32 (review item);
    # bf16 tables get promoted to f32 before multiply/accumulate.
    return x if x.dtype == jnp.float32 else x.astype(jnp.float32)


def _bpr_score_kernel(u_ref, i_ref, j_ref, out_ref):
    # u_ref / i_ref / j_ref: (D, TB) tiles -- batch in the lane dimension.
    # out_ref:               (2, TB) lane-dense tile; row 0 = pos, row 1 = neg.
    u = _as_f32(u_ref[...])
    i = _as_f32(i_ref[...])
    j = _as_f32(j_ref[...])
    out_ref[0:1, :] = jnp.sum(u * i, axis=0, keepdims=True)
    out_ref[1:2, :] = jnp.sum(u * j, axis=0, keepdims=True)


@partial(jax.jit, static_argnames=("tb", "input_buffering"))
def bpr_forward(batch_user, batch_pos_item, batch_neg_item,
                user_emb, item_emb, *, tb=2048, input_buffering=None):
    """Returns (pos_score, neg_score), each (batch, 1) float32.

    Matches:  u = user_emb[batch_user]; i = item_emb[batch_pos]; j = item_emb[batch_neg]
              pos = (u*i).sum(1, keepdim=True); neg = (u*j).sum(1, keepdim=True)

    Note: out-of-range indices are clamped (mode="clip"), where the PyTorch
    reference would raise -- acceptable per review, documented here.
    """
    B = batch_user.shape[0]
    D = user_emb.shape[1]
    # D is used as the full first block dim (block == full array dim), so
    # arbitrary D lowers fine; multiples of 8 (f32) / 16 (bf16) stay densest.

    # --- tile selection -----------------------------------------------------
    itemsize = np.dtype(user_emb.dtype).itemsize
    # Bytes of double-buffered input blocks held in VMEM per batch element.
    bytes_per_elem = 3 * D * itemsize * 2
    vmem_budget = 8 * 1024 * 1024                       # comfortable on v7x 64 MiB
    tb_vmem_cap = max(128, (vmem_budget // max(bytes_per_elem, 1)) // 128 * 128)
    # Keep >=2 grid steps when the batch allows it (v7x has 2 TensorCores and
    # the grid is the only parallel axis).
    tb_two_steps = _round_up(-(-B // 2), 128)
    TB = max(128, min(tb, tb_two_steps, tb_vmem_cap))
    B_pad = _round_up(B, TB)

    # --- pad the *index* vectors (tiny 1-D copies), not the gathered floats --
    bu = batch_user.astype(jnp.int32)
    bp = batch_pos_item.astype(jnp.int32)
    bn = batch_neg_item.astype(jnp.int32)
    if B_pad != B:
        pad = (0, B_pad - B)
        bu = jnp.pad(bu, pad)   # pads with index 0, always a valid row
        bp = jnp.pad(bp, pad)
        bn = jnp.pad(bn, pad)

    # Wrapper-side row gather, transposed to batch-in-lanes (D, B_pad).
    # allow_input_fusion below lets XLA fold the transpose (and possibly the
    # gather) into the pallas_call operand instead of materializing it in HBM.
    # TODO(synk): fuse the gather fully into the kernel (VMEM-resident tables +
    # jnp.take on the ref) once Mosaic supports general dynamic row-gather;
    # today's gather lowering does not cover this (table rows >> 8 sublanes).
    u_t = jnp.take(user_emb, bu, axis=0, mode="clip").T   # (D, B_pad)
    i_t = jnp.take(item_emb, bp, axis=0, mode="clip").T   # (D, B_pad)
    j_t = jnp.take(item_emb, bn, axis=0, mode="clip").T   # (D, B_pad)

    # --- pallas_call ----------------------------------------------------------
    if input_buffering is None:
        in_spec = pl.BlockSpec((D, TB), lambda t: (0, t))
    else:
        in_spec = pl.BlockSpec((D, TB), lambda t: (0, t),
                               pipeline_mode=pl.Buffered(input_buffering))
    out_spec = pl.BlockSpec((2, TB), lambda t: (0, t))

    scores = pl.pallas_call(
        _bpr_score_kernel,
        grid=(B_pad // TB,),
        in_specs=[in_spec, in_spec, in_spec],
        out_specs=out_spec,
        out_shape=jax.ShapeDtypeStruct((2, B_pad), jnp.float32),
        compiler_params=pltpu.CompilerParams(
            dimension_semantics=("parallel",),
            allow_input_fusion=[True, True, True],
        ),
    )(u_t, i_t, j_t)

    pos_score = scores[0, :B].reshape(B, 1)
    neg_score = scores[1, :B].reshape(B, 1)
    return pos_score, neg_score


def bpr_loss(pos_score, neg_score):
    # -(pos - neg).sigmoid().log().sum(), numerically stable form.
    return -jnp.sum(jax.nn.log_sigmoid(pos_score - neg_score))


def _reference(batch_user, batch_pos, batch_neg, user_emb, item_emb):
    u = user_emb[batch_user]
    i = item_emb[batch_pos]
    j = item_emb[batch_neg]
    ref_pos = jnp.sum(u * i, axis=1, keepdims=True)
    ref_neg = jnp.sum(u * j, axis=1, keepdims=True)
    return ref_pos, ref_neg


if __name__ == "__main__":
    user_count, item_count, dim = 64, 128, 32

    key = jax.random.PRNGKey(0)
    k_u, k_i, k_bu, k_bp, k_bn = jax.random.split(key, 5)

    # nn.init.normal_(..., mean=0.0, std=0.01)
    user_emb = (0.01 * jax.random.normal(k_u, (user_count, dim))).astype(jnp.float32)
    item_emb = (0.01 * jax.random.normal(k_i, (item_count, dim))).astype(jnp.float32)

    # --- small batch: single padded 128-wide tile ---
    batch = 8
    batch_user = jax.random.randint(k_bu, (batch,), 0, user_count, dtype=jnp.int32)
    batch_pos = jax.random.randint(k_bp, (batch,), 0, item_count, dtype=jnp.int32)
    batch_neg = jax.random.randint(k_bn, (batch,), 0, item_count, dtype=jnp.int32)

    pos_score, neg_score = bpr_forward(batch_user, batch_pos, batch_neg,
                                       user_emb, item_emb)
    jax.block_until_ready((pos_score, neg_score))
    ref_pos, ref_neg = _reference(batch_user, batch_pos, batch_neg,
                                  user_emb, item_emb)
    assert np.allclose(np.asarray(pos_score), np.asarray(ref_pos), atol=1e-6)
    assert np.allclose(np.asarray(neg_score), np.asarray(ref_neg), atol=1e-6)

    # --- mid batch: exercises 2 grid steps (dual-TC path) + index padding ---
    batch2 = 1000
    k2u, k2p, k2n = jax.random.split(jax.random.PRNGKey(1), 3)
    bu2 = jax.random.randint(k2u, (batch2,), 0, user_count, dtype=jnp.int32)
    bp2 = jax.random.randint(k2p, (batch2,), 0, item_count, dtype=jnp.int32)
    bn2 = jax.random.randint(k2n, (batch2,), 0, item_count, dtype=jnp.int32)

    pos2, neg2 = bpr_forward(bu2, bp2, bn2, user_emb, item_emb)
    jax.block_until_ready((pos2, neg2))
    rp2, rn2 = _reference(bu2, bp2, bn2, user_emb, item_emb)
    assert np.allclose(np.asarray(pos2), np.asarray(rp2), atol=1e-6)
    assert np.allclose(np.asarray(neg2), np.asarray(rn2), atol=1e-6)

    # --- large batch: hits the full TB=2048 tile and a multi-step grid ---
    batch3 = 5000
    k3u, k3p, k3n = jax.random.split(jax.random.PRNGKey(2), 3)
    bu3 = jax.random.randint(k3u, (batch3,), 0, user_count, dtype=jnp.int32)
    bp3 = jax.random.randint(k3p, (batch3,), 0, item_count, dtype=jnp.int32)
    bn3 = jax.random.randint(k3n, (batch3,), 0, item_count, dtype=jnp.int32)

    pos3, neg3 = bpr_forward(bu3, bp3, bn3, user_emb, item_emb)
    jax.block_until_ready((pos3, neg3))
    rp3, rn3 = _reference(bu3, bp3, bn3, user_emb, item_emb)
    assert np.allclose(np.asarray(pos3), np.asarray(rp3), atol=1e-6)
    assert np.allclose(np.asarray(neg3), np.asarray(rn3), atol=1e-6)

    # exercise the (numerically stable) loss glue as well
    _ = jax.block_until_ready(bpr_loss(pos_score, neg_score))

    print("KERNEL_OK")
</pallas_src>

<mosaic_0001>
module attributes {stable_mosaic.version = 11 : i64} {
  func.func @_bpr_score_kernel(%arg0: i32, %arg1: memref<32x128xf32, #tpu.memory_space<vmem>>, %arg2: memref<32x128xf32, #tpu.memory_space<vmem>>, %arg3: memref<32x128xf32, #tpu.memory_space<vmem>>, %arg4: memref<2x128xf32, #tpu.memory_space<vmem>>) attributes {dimension_semantics = [#tpu.dimension_semantics<parallel>], iteration_bounds = array<i64: 1>, scalar_prefetch = 0 : i64, scratch_operands = 0 : i64, tpu.core_type = #tpu.core_type<tc>, window_params = [{transform_indices = @transform_0, window_bounds = array<i64: 32, 128>}, {transform_indices = @transform_1, window_bounds = array<i64: 32, 128>}, {transform_indices = @transform_2, window_bounds = array<i64: 32, 128>}, {transform_indices = @transform_3, window_bounds = array<i64: 2, 128>}]} {
    %c0 = arith.constant 0 : index
    %c0_0 = arith.constant 0 : index
    %0 = vector.load %arg1[%c0, %c0_0] : memref<32x128xf32, #tpu.memory_space<vmem>>, vector<32x128xf32>
    %c0_1 = arith.constant 0 : index
    %c0_2 = arith.constant 0 : index
    %1 = vector.load %arg2[%c0_1, %c0_2] : memref<32x128xf32, #tpu.memory_space<vmem>>, vector<32x128xf32>
    %c0_3 = arith.constant 0 : index
    %c0_4 = arith.constant 0 : index
    %2 = vector.load %arg3[%c0_3, %c0_4] : memref<32x128xf32, #tpu.memory_space<vmem>>, vector<32x128xf32>
    %3 = arith.mulf %0, %1 : vector<32x128xf32>
    %cst = arith.constant dense<0.000000e+00> : vector<128xf32>
    %4 = vector.multi_reduction <add>, %3, %cst [0] : vector<32x128xf32> to vector<128xf32>
    %5 = vector.shape_cast %4 : vector<128xf32> to vector<1x128xf32>
    %c0_5 = arith.constant 0 : index
    %c0_6 = arith.constant 0 : index
    %6 = vector.load %arg4[%c0_5, %c0_6] : memref<2x128xf32, #tpu.memory_space<vmem>>, vector<1x128xf32>
    tpu.vector_store %arg4[%c0_5, %c0_6], %5 {strides = array<i32>} : memref<2x128xf32, #tpu.memory_space<vmem>>, vector<1x128xf32>,
    %7 = arith.mulf %0, %2 : vector<32x128xf32>
    %cst_7 = arith.constant dense<0.000000e+00> : vector<128xf32>
    %8 = vector.multi_reduction <add>, %7, %cst_7 [0] : vector<32x128xf32> to vector<128xf32>
    %9 = vector.shape_cast %8 : vector<128xf32> to vector<1x128xf32>
    %c1 = arith.constant 1 : index
    %c0_8 = arith.constant 0 : index
    %10 = vector.load %arg4[%c1, %c0_8] : memref<2x128xf32, #tpu.memory_space<vmem>>, vector<1x128xf32>
    tpu.vector_store %arg4[%c1, %c0_8], %9 {strides = array<i32>} : memref<2x128xf32, #tpu.memory_space<vmem>>, vector<1x128xf32>,
    return
  }
  func.func @transform_0(%arg0: i32) -> (i32, i32) {
    %c0_i32 = arith.constant 0 : i32
    %c0_i32_0 = arith.constant 0 : i32
    return %c0_i32, %arg0 : i32, i32
  }
  func.func @transform_1(%arg0: i32) -> (i32, i32) {
    %c0_i32 = arith.constant 0 : i32
    %c0_i32_0 = arith.constant 0 : i32
    return %c0_i32, %arg0 : i32, i32
  }
  func.func @transform_2(%arg0: i32) -> (i32, i32) {
    %c0_i32 = arith.constant 0 : i32
    %c0_i32_0 = arith.constant 0 : i32
    return %c0_i32, %arg0 : i32, i32
  }
  func.func @transform_3(%arg0: i32) -> (i32, i32) {
    %c0_i32 = arith.constant 0 : i32
    %c0_i32_0 = arith.constant 0 : i32
    return %c0_i32, %arg0 : i32, i32
  }
}

</mosaic_0001>

<bundles_post_ra>
// kernel: bpr_forward.2
= control target key start
LH: loop header
LB: loop body
LE: loop exit
PB: predicated region body
PF: predicated region fallthrough
CT: control target
= control target key end

     0   :  { %s183_s0 = inlined_call_operand.vmem [shape: f32[128,32], index: 0, kind: input, shape index: {}]   ;;  %s184_s1 = inlined_call_operand.vmem [shape: f32[128,32], index: 1, kind: input, shape index: {}]   ;;  %s185_s2 = inlined_call_operand.vmem [shape: f32[128,32], index: 2, kind: input, shape index: {}]   ;;  %s186_s3 = inlined_call_operand.vmem [shape: f32[2,128], index: 3, kind: output, shape index: {}]  }
   0x1   :  { %v14_v0 = vld [vmem:[%s185_s2] sm:$0xff]  ;;  %v112_v1 = vld [vmem:[%s185_s2 + $0x8] sm:$0xff]  ;;  %v113_v2 = vld [vmem:[%s185_s2 + $0x10] sm:$0xff] }
   0x2   :  { %v114_v3 = vld [vmem:[%s185_s2 + $0x18] sm:$0xff]  ;;  %v32_v4 = vld [vmem:[%s184_s1] sm:$0xff]  ;;  %v115_v5 = vld [vmem:[%s184_s1 + $0x8] sm:$0xff] }
   0x3   :  { %v116_v6 = vld [vmem:[%s184_s1 + $0x10] sm:$0xff]  ;;  %v117_v7 = vld [vmem:[%s184_s1 + $0x18] sm:$0xff]  ;;  %v50_v8 = vld [vmem:[%s183_s0] sm:$0xff]  ;;  %v80_v9 = vmul.f32 %v32_v4, %v14_v0  ;;  %v81_v10 = vmul.f32 %v115_v5, %v112_v1 }
   0x4   :  { %v118_v11 = vld [vmem:[%s183_s0 + $0x8] sm:$0xff]  ;;  %v119_v12 = vld [vmem:[%s183_s0 + $0x10] sm:$0xff]  ;;  %v120_v13 = vld [vmem:[%s183_s0 + $0x18] sm:$0xff]  ;;  %v82_v14 = vmul.f32 %v116_v6, %v113_v2  ;;  %v94_v15 = vmul.f32 %v50_v8, %v14_v0  ;;  %v83_v16 = vmul.f32 %v117_v7, %v114_v3 }
   0x5   :  { %v84_v17 = vadd.f32 %v81_v10, %v80_v9  ;;  %v95_v18 = vmul.f32 %v118_v11, %v112_v1  ;;  %v96_v19 = vmul.f32 %v119_v12, %v113_v2  ;;  %v97_v21 = vmul.f32 %v120_v13, %v114_v3 }
   0x7   :  { %v85_v20 = vadd.f32 %v84_v17, %v82_v14  ;;  %v98_v22 = vadd.f32 %v95_v18, %v94_v15 }
   0x9   :  { %v86_v23 = vadd.f32 %v85_v20, %v83_v16  ;;  %v99_v24 = vadd.f32 %v98_v22, %v96_v19 }
   0xb   :  { %v87_v25 = vrot.slane %v86_v23, 4  ;;  %v100_v26 = vadd.f32 %v99_v24, %v97_v21 }
   0xd   :  { %v88_v27 = vadd.f32 %v87_v25, %v86_v23  ;;  %v101_v28 = vrot.slane %v100_v26, 4 }
   0xf   :  { %v89_v29 = vrot.slane %v88_v27, 2  ;;  %v102_v30 = vadd.f32 %v101_v28, %v100_v26 }
  0x11   :  { %v90_v31 = vadd.f32 %v89_v29, %v88_v27  ;;  %v103_v32 = vrot.slane %v102_v30, 2 }
  0x13   :  { %v91_v33 = vrot.slane %v90_v31, 1  ;;  %v104_v34 = vadd.f32 %v103_v32, %v102_v30 }
  0x15   :  { %v92_v35 = vadd.f32 %v91_v33, %v90_v31  ;;  %v105_v36 = vrot.slane %v104_v34, 1 }
  0x17   :  { %93 = vst [vmem:[%s186_s3] sm:$0x1] %v92_v35  ;;  %v106_v37 = vadd.f32 %v105_v36, %v104_v34 }
  0x19   :  { %107 = vst [vmem:[%s186_s3 + $0x1] sm:$0x1] %v106_v37 }

</bundles_post_ra>
